<compile_context>
chip_gen: v7x
topology: tpu7x:2x2x1
jax: 0.10.0
libtpu: 0.0.40
codegen_flags: <defaults>
</compile_context>

<pallas_src>
import jax
import jax.numpy as jnp
from jax.experimental import pallas as pl
from jax.experimental.pallas import tpu as pltpu

_LANE = 128
_SUBLANE = 8
_ACC_ROWS = 64          # 8 vreg-sized (8,128) f32 partial accumulators
_MAX_TILE_ROWS = 8192   # (8192, 128) f32 = 4 MiB streamed block


def _cdiv(a: int, b: int) -> int:
    return (a + b - 1) // b


def _round_up(x: int, m: int) -> int:
    return _cdiv(x, m) * m


def _vmem_capacity_bytes() -> int:
    try:
        return int(pltpu.get_tpu_info().vmem_capacity_bytes)
    except Exception:
        return 64 * 1024 * 1024   # conservative (v7x per-core VMEM)


# ----------------------------------------------------------------------------
# Small-tensor fast path: whole slab resident in VMEM, single pass.
# ----------------------------------------------------------------------------
def _fused_kernel(x_ref, o_ref):
    xb = x_ref[...].astype(jnp.float32)
    inv = jax.lax.rsqrt(jnp.sum(xb * xb))
    o_ref[...] = (xb * inv).astype(o_ref.dtype)


# ----------------------------------------------------------------------------
# Pass 1: per-split sum-of-squares partials accumulated into a small resident
# (acc_rows, 128) output block.  Mask only the ragged/overhang tiles.
# ----------------------------------------------------------------------------
def _make_sumsq_kernel(tile_rows, acc_rows, valid_rows, steps_per_split):
    def kernel(x_ref, part_ref):
        c = pl.program_id(0)
        i = pl.program_id(1)
        g = c * steps_per_split + i          # global (unclamped) block index

        @pl.when(i == 0)
        def _():
            part_ref[...] = jnp.zeros_like(part_ref)

        def accumulate(xb):
            x2 = xb * xb
            # (tile_rows,128) -> (tile_rows/acc_rows, acc_rows, 128); the
            # axis-0 reduce is pure per-vreg VPU adds into 8 independent
            # accumulator chains (no XLU, no per-step full-tile store).
            part_ref[...] += jnp.sum(x2.reshape(-1, acc_rows, _LANE), axis=0)

        full_tile = (g + 1) * tile_rows <= valid_rows

        @pl.when(full_tile)
        def _():
            accumulate(x_ref[...].astype(jnp.float32))

        @pl.when(jnp.logical_not(full_tile))
        def _():
            # Ragged last tile / split-overhang tile: mask rows BEFORE
            # squaring so unspecified edge data never reaches the sum.
            row_ids = g * tile_rows + jax.lax.broadcasted_iota(
                jnp.int32, (tile_rows, _LANE), 0)
            xb = jnp.where(row_ids < valid_rows,
                           x_ref[...].astype(jnp.float32), 0.0)
            accumulate(xb)

    return kernel


# ----------------------------------------------------------------------------
# Pass 2: reduce the tiny partial bank + rsqrt in-register, then scale.
# ----------------------------------------------------------------------------
def _scale_kernel(part_ref, x_ref, o_ref):
    inv = jax.lax.rsqrt(jnp.sum(part_ref[...]))
    o_ref[...] = (x_ref[...].astype(jnp.float32) * inv).astype(o_ref.dtype)


def ofn(x: jax.Array, *, _force_two_pass: bool = False,
        _max_tile_rows: int | None = None) -> jax.Array:
    """Pallas implementation of OFN.forward: x / ||x||_2 (global norm)."""
    orig_shape = x.shape
    orig_dtype = x.dtype
    n = x.size
    if n == 0:
        return x

    flat = x.reshape(-1)
    n_pad = (-n) % _LANE
    if n_pad:
        # Only truly lane-ragged sizes pay a pad copy; any n % 128 == 0
        # streams straight from the original buffer (no concat, no slice).
        flat = jnp.pad(flat, (0, n_pad))
    slab = flat.reshape(-1, _LANE)
    rows = slab.shape[0]

    vmem_cap = _vmem_capacity_bytes()
    fused_max_bytes = vmem_cap // 16            # ~8 MiB (v5e/v6e), ~4 MiB (v7x)
    vmem_limit = int(min(48 * 1024 * 1024, 0.7 * vmem_cap))
    slab_f32_bytes = rows * _LANE * 4

    if slab_f32_bytes <= fused_max_bytes and not _force_two_pass:
        # Fully VMEM-resident single pass: 1 HBM read + 1 write, one launch.
        out_slab = pl.pallas_call(
            _fused_kernel,
            out_shape=jax.ShapeDtypeStruct(slab.shape, orig_dtype),
            compiler_params=pltpu.CompilerParams(vmem_limit_bytes=vmem_limit),
        )(slab)
    else:
        max_tile_rows = _round_up(_max_tile_rows or _MAX_TILE_ROWS, _SUBLANE)
        tile_rows = min(max_tile_rows, _round_up(rows, _ACC_ROWS))
        acc_rows = _ACC_ROWS if tile_rows % _ACC_ROWS == 0 else _SUBLANE
        steps = _cdiv(rows, tile_rows)
        n_split = 2 if steps >= 8 else 1        # shard pass 1 across TCs (v7x)
        spc = _cdiv(steps, n_split)             # steps per split
        last_block = steps - 1

        # Pass 1: per-split (acc_rows, 128) sum-of-squares partial banks.
        partials = pl.pallas_call(
            _make_sumsq_kernel(tile_rows, acc_rows, rows, spc),
            out_shape=jax.ShapeDtypeStruct((n_split * acc_rows, _LANE),
                                           jnp.float32),
            grid_spec=pltpu.PrefetchScalarGridSpec(
                num_scalar_prefetch=0,
                grid=(n_split, spc),
                in_specs=[pl.BlockSpec(
                    (tile_rows, _LANE),
                    # Clamp split-overhang blocks to the last valid block;
                    # their contribution is masked to zero in the kernel.
                    lambda c, i: (jnp.minimum(c * spc + i, last_block), 0))],
                out_specs=pl.BlockSpec((acc_rows, _LANE),
                                       lambda c, i: (c, 0)),
            ),
            compiler_params=pltpu.CompilerParams(
                dimension_semantics=("parallel", "arbitrary"),
                vmem_limit_bytes=vmem_limit),
        )(slab)

        # Pass 2: y = x * rsqrt(sum(partials)), streamed, both TCs parallel.
        out_slab = pl.pallas_call(
            _scale_kernel,
            out_shape=jax.ShapeDtypeStruct(slab.shape, orig_dtype),
            grid_spec=pltpu.PrefetchScalarGridSpec(
                num_scalar_prefetch=0,
                grid=(steps,),
                in_specs=[
                    pl.BlockSpec((n_split * acc_rows, _LANE),
                                 lambda i: (0, 0)),
                    pl.BlockSpec((tile_rows, _LANE), lambda i: (i, 0)),
                ],
                out_specs=pl.BlockSpec((tile_rows, _LANE), lambda i: (i, 0)),
            ),
            compiler_params=pltpu.CompilerParams(
                dimension_semantics=("parallel",),
                vmem_limit_bytes=vmem_limit),
        )(partials, slab)

    if n_pad:
        return out_slab.reshape(-1)[:n].reshape(orig_shape)
    return out_slab.reshape(orig_shape)


def _check(x, rtol=5e-5, atol=1e-6, force_two_pass=False, max_tile_rows=None):
    y = jax.block_until_ready(
        ofn(x, _force_two_pass=force_two_pass, _max_tile_rows=max_tile_rows))
    y_ref = x / jnp.sqrt(jnp.sum(x.astype(jnp.float32) ** 2))
    assert y.shape == x.shape and y.dtype == x.dtype
    err = float(jnp.max(jnp.abs(y - y_ref)))
    assert jnp.allclose(y, y_ref, rtol=rtol, atol=atol), err


if __name__ == "__main__":
    key = jax.random.PRNGKey(0)
    k0, k1, k2, k3 = jax.random.split(key, 4)

    # Primary NCHW-style input (fused, fully VMEM-resident path).
    _check(jax.random.normal(k0, (2, 4, 16, 16), dtype=jnp.float32))

    # Lane-ragged element count: exercises the (tiny) pad + trailing slice.
    _check(jax.random.normal(k1, (3, 5, 37, 41), dtype=jnp.float32))

    # Forced two-pass streaming path, tiling divides evenly (no masking).
    _check(jax.random.normal(k2, (4, 8, 64, 64), dtype=jnp.float32),
           force_two_pass=True, max_tile_rows=512)

    # Forced two-pass with ragged last tile + 2-way split overhang block.
    _check(jax.random.normal(k3, (8, 16, 80, 80), dtype=jnp.float32),
           force_two_pass=True, max_tile_rows=512)

    print("KERNEL_OK")
</pallas_src>

<mosaic_0001>
module attributes {stable_mosaic.version = 11 : i64} {
  func.func @_fused_kernel(%arg0: memref<16x128xf32, #tpu.memory_space<vmem>>, %arg1: memref<16x128xf32, #tpu.memory_space<vmem>>) attributes {dimension_semantics = [], scalar_prefetch = 0 : i64, scratch_operands = 0 : i64, tpu.core_type = #tpu.core_type<tc>} {
    %c0 = arith.constant 0 : index
    %c0_0 = arith.constant 0 : index
    %0 = vector.load %arg0[%c0, %c0_0] : memref<16x128xf32, #tpu.memory_space<vmem>>, vector<16x128xf32>
    %1 = arith.mulf %0, %0 : vector<16x128xf32>
    %2 = vector.shape_cast %1 : vector<16x128xf32> to vector<1x16x128xf32>
    %cst = arith.constant dense<0.000000e+00> : vector<1xf32>
    %3 = vector.multi_reduction <add>, %2, %cst [1, 2] : vector<1x16x128xf32> to vector<1xf32>
    %4 = vector.shape_cast %3 : vector<1xf32> to vector<1x1x1xf32>
    %5 = vector.extract %4[0, 0, 0] : f32 from vector<1x1x1xf32>
    %6 = math.rsqrt %5 : f32
    %7 = vector.broadcast %6 : f32 to vector<16x128xf32>
    %8 = arith.mulf %0, %7 : vector<16x128xf32>
    %c0_1 = arith.constant 0 : index
    %c0_2 = arith.constant 0 : index
    %9 = vector.load %arg1[%c0_1, %c0_2] : memref<16x128xf32, #tpu.memory_space<vmem>>, vector<16x128xf32>
    tpu.vector_store %arg1[%c0_1, %c0_2], %8 {strides = array<i32>} : memref<16x128xf32, #tpu.memory_space<vmem>>, vector<16x128xf32>,
    return
  }
}

</mosaic_0001>

<bundles_post_ra>
// kernel: tpu_custom_call.1
= control target key start
LH: loop header
LB: loop body
LE: loop exit
PB: predicated region body
PF: predicated region fallthrough
CT: control target
= control target key end

     0   :  { %6 = vsyncpa [#allocation3], 0  ;;  %s164_s0 = inlined_call_operand.hbm [shape: f32[16,128], index: 0, kind: input, shape index: {}]   ;;  %s165_s1 = inlined_call_operand.hbm [shape: f32[16,128], index: 1, kind: output, shape index: {}]  }
   0x1   :  { %7 = vsyncpa [#allocation4], 0  ;;  %s120_s6 = smov [#allocation2]   ;;  %s72_s10 = scalar_lea.hbm %s164_s0, 256 }
   0x2   :  { %s13_s7 = sshll.u32 %s120_s6, 4  ;;  %p73_p0 = scmp.ne.s32.totalorder %s164_s0, %s72_s10  ;;  %s14_s7 = int_to_ptr.vmem [resolvable:$true] %s13_s7 }
   0x3   :  { %p76_p1 = scmp.lt.u32.totalorder %s72_s10, %s164_s0 }
   0x5   :  { %p78_p2 = pnand %p76_p1, %p73_p0 }
   0x7   :  { %81 = shalt.err (!%p78_p2)
}
   0x8   :  { %s82_s15 = scalar_lea.vmem %s14_s7, 256  ;;  %p87_p4 = scmp.lt.s32.totalorder %s14_s7, %s14_s7 }
   0x9   :  { %p83_p3 = scmp.ne.s32.totalorder %s14_s7, %s82_s15  ;;  %p88_p5 = scmp.lt.s32.totalorder %s82_s15, %s82_s15 }
   0xb   :  { %p89_p6 = por %p88_p5, %p87_p4 }
   0xd   :  { %p90_p7 = pnand %p89_p6, %p83_p3 }
   0xf   :  { %93 = shalt.err (!%p90_p7)
}
  0x10   :  { %s121_s16 = smov 128   ;;  %s122_s17 = smov 8  }
  0x11   :  { %19 = dma.hbm_to_vmem [thread:$0]  %s164_s0, 256, %s14_s7, [#allocation3], %s121_s16, %s121_s16, %s122_s17  }
  0x12   :  { %116 = dma.done.wait [#allocation3], 256  }
  0x13   :  { %117 = vsyncadd [#allocation3], 4294967040  ;;  %v23_v0 = vld [vmem:[#allocation2] sm:$0xff]  ;;  %v24_v1 = vld [vmem:[#allocation2 + $0x8] sm:$0xff]  ;;  %s123_s0 = smov [#allocation5]  }
  0x14   :  { %v25_v2 = vmul.f32 %v23_v0, %v23_v0  ;;  %v26_v3 = vmul.f32 %v24_v1, %v24_v1  ;;  %s50_s21 = sshll.u32 %s123_s0, 4  ;;  %s51_s21 = int_to_ptr.vmem [resolvable:$true] %s50_s21 }
  0x15   :  { %s94_s23 = scalar_lea.vmem %s51_s21, 256  ;;  %p99_p9 = scmp.lt.s32.totalorder %s51_s21, %s51_s21 }
  0x16   :  { %v27_v4 = vadd.f32 %v26_v3, %v25_v2  ;;  %p95_p8 = scmp.ne.s32.totalorder %s51_s21, %s94_s23  ;;  %p100_p10 = scmp.lt.s32.totalorder %s94_s23, %s94_s23 }
  0x18   :  { %28 = vadd.xlane.f32.xlu0 %v27_v4  ;;  %p101_p11 = por %p100_p10, %p99_p9 }
  0x1a   :  { %p102_p12 = pnand %p101_p11, %p95_p8 }
  0xa5   :  { %v29_v5 = vpop.xlane.xlu0 %28 }
  0xa6   :  { %v30_v6 = vrot.slane %v29_v5, 4 }
  0xa8   :  { %v31_v7 = vadd.f32 %v30_v6, %v29_v5 }
  0xaa   :  { %v32_v8 = vrot.slane %v31_v7, 2 }
  0xac   :  { %v33_v9 = vadd.f32 %v32_v8, %v31_v7 }
  0xae   :  { %v34_v10 = vrot.slane %v33_v9, 1 }
  0xb0   :  { %v35_v11 = vadd.f32 %v34_v10, %v33_v9 }
  0xb2   :  { %62 = vpush %v35_v11 }
  0xe3   :  { %s63_s20 = spop %62 }
  0xe4   :  { %v37_v12 = vstv %s63_s20 }
  0xe5   :  { %70 = vrsqrt.f32 %v37_v12 }
  0xef   :  { %v71_v13 = vpop.eup %70 }
  0xf0   :  { %64 = vpush %v71_v13 }
 0x121   :  { %s65_s22 = spop %64 }
 0x122   :  { %v40_v14 = vstv %s65_s22 }
 0x123   :  { %v41_v15 = vmul.f32 %v40_v14, %v23_v0  ;;  %v42_v16 = vmul.f32 %v40_v14, %v24_v1 }
 0x125   :  { %43 = vst [vmem:[#allocation5] sm:$0xff] %v41_v15  ;;  %44 = vst [vmem:[#allocation5 + $0x8] sm:$0xff] %v42_v16 }
 0x126   :  { %105 = shalt.err (!%p102_p12)
}
 0x127   :  { %s106_s26 = scalar_lea.hbm %s165_s1, 256 }
 0x128   :  { %p107_p13 = scmp.ne.s32.totalorder %s165_s1, %s106_s26  ;;  %p110_p0 = scmp.lt.u32.totalorder %s106_s26, %s165_s1 }
 0x12a   :  { %p112_p1 = pnand %p110_p0, %p107_p13 }
 0x12c   :  { %115 = shalt.err (!%p112_p1)
}
 0x12d   :  { %56 = dma.vmem_to_hbm [thread:$0]  %s51_s21, 256, %s165_s1, [#allocation4], %s121_s16, %s121_s16, %s122_s17  }
 0x12e   :  { %118 = dma.done.wait [#allocation4], 256  }
 0x12f   :  { %119 = vsyncadd [#allocation4], 4294967040 }
 0x130   :  { %60 = vsyncpa [#allocation3], 1 }
 0x131   :  { %61 = vsyncpa [#allocation4], 1 }

</bundles_post_ra>
